<compile_context>
chip_gen: v7x
topology: tpu7x:2x2x1
jax: 0.10.0
libtpu: 0.0.40
codegen_flags: <defaults>
</compile_context>

<pallas_src>
import functools

import jax
import jax.numpy as jnp
from jax.experimental import pallas as pl
from jax.experimental.pallas import tpu as pltpu


def _mbstd_kernel(x_ref, o_ref, acc_ref, *, group_size, num_groups,
                  n_x_tiles, eps, inv_denom):
    """x_ref: (B, TC) in-dtype, o_ref: (B, TC) in-dtype, acc_ref: SMEM (1,) f32."""
    j = pl.program_id(0)

    @pl.when(j == 0)
    def _init():
        acc_ref[0] = jnp.float32(0.0)

    # ---- pass-through tiles: copy x and accumulate the std statistic -------
    @pl.when(j < n_x_tiles)
    def _copy_and_reduce():
        x = x_ref[...]                       # (B, TC), native dtype
        o_ref[...] = x                       # lane-dense pass-through store

        xf = x.astype(jnp.float32)           # stats in f32 (v5e VPU has no bf16)
        gs, ng = group_size, num_groups

        # Mean over the group dim using *contiguous* row slices
        # (batch index = g * num_groups + n, so group g is rows [g*ng, (g+1)*ng)).
        s = xf[0:ng, :]
        for g in range(1, gs):
            s = s + xf[g * ng:(g + 1) * ng, :]
        mu = s * (1.0 / gs)                  # (ng, TC)

        # Centered sum of squares (avoid E[x^2]-E[x]^2 cancellation).
        v = jnp.zeros_like(mu)
        for g in range(gs):
            d = xf[g * ng:(g + 1) * ng, :] - mu
            v = v + d * d
        std = jnp.sqrt(v * (1.0 / gs) + eps)  # (ng, TC)

        acc_ref[0] = acc_ref[0] + jnp.sum(std)

    # ---- stat tiles: broadcast the finished scalar into the extra channel --
    @pl.when(j >= n_x_tiles)
    def _write_stat():
        stat = acc_ref[0] * inv_denom        # mean over (num_groups, C, H, W)
        o_ref[...] = jnp.full(o_ref.shape, stat, dtype=o_ref.dtype)


def _pick_tile(chw, hw, bytes_per_lane_col, vmem_budget=4 << 20):
    """Pick a lane-tile size TC (multiple of 128) dividing chw, VMEM-bounded.

    bytes_per_lane_col = VMEM bytes consumed per lane column by the
    double-buffered input + output tiles.  The budget keeps the pipeline well
    under even v5e's 16 MiB / v7x's 32 MiB scoped-VMEM defaults.
    """
    max_lanes = max(128, vmem_budget // max(1, bytes_per_lane_col))
    cands = [c for c in (8192, 4096, 2048, 1024, 512, 256, 128) if c <= max_lanes]
    best_x = next((c for c in cands if chw % c == 0), None)
    best_all = next((c for c in cands
                     if chw % c == 0 and (chw + hw) % c == 0), None)
    if best_x is None:
        # chw is not a multiple of 128: fall back to a single x tile
        # (may lower to masked stores; only hit for unusual shapes).
        return chw
    if best_all is not None and best_all * 4 >= best_x:
        return best_all      # every block (incl. the stat block) is full/lane-dense
    return best_x            # last block is partial; OOB columns are masked


def minibatch_stddev(x, group_size=4, eps=1e-8):
    """Equivalent of MinibatchStdDev.forward for NCHW input x (any float dtype)."""
    B, C, H, W = x.shape
    gs = B if (B % group_size != 0) else group_size
    ng = B // gs
    hw = H * W
    chw = C * hw

    x2 = x.reshape(B, chw)                     # native dtype, free reshape (view)
    itemsize = jnp.dtype(x.dtype).itemsize
    # double-buffered input tile + double-buffered output tile, per lane column
    tc = _pick_tile(chw, hw, bytes_per_lane_col=4 * B * itemsize)
    n_x_tiles = max(1, chw // tc)
    num_tiles = pl.cdiv(chw + hw, tc)

    kern = functools.partial(
        _mbstd_kernel,
        group_size=gs, num_groups=ng, n_x_tiles=n_x_tiles,
        eps=eps, inv_denom=1.0 / (ng * chw),
    )

    out2 = pl.pallas_call(
        kern,
        out_shape=jax.ShapeDtypeStruct((B, chw + hw), x.dtype),
        grid=(num_tiles,),
        in_specs=[
            # Clamp the block index for the trailing stat tile(s): they do not
            # need fresh input (the repeated index avoids a redundant fetch).
            pl.BlockSpec((B, tc),
                         lambda j, _n=n_x_tiles: (0, jnp.minimum(j, _n - 1))),
        ],
        out_specs=pl.BlockSpec((B, tc), lambda j: (0, j)),
        scratch_shapes=[pltpu.SMEM((1,), jnp.float32)],   # running sum of std
        compiler_params=pltpu.CompilerParams(
            dimension_semantics=("arbitrary",),           # sequential reduction
            vmem_limit_bytes=32 * 1024 * 1024,            # safe on v5e/v6e/v7x
        ),
    )(x2)

    # TODO(synk): a two-pass (parallel reduce + parallel copy) variant could
    # shard across v7x's two TensorCores; single-pass minimizes HBM traffic.
    return out2.reshape(B, C + 1, H, W)


def _reference(x, group_size=4, eps=1e-8):
    """Pure-JAX port of the PyTorch forward (f32 internal math), for checks."""
    B, C, H, W = x.shape
    gs = B if (B % group_size != 0) else group_size
    ng = B // gs
    xf = x.astype(jnp.float32)
    y = xf.reshape(gs, ng, C, H, W)
    y = y - y.mean(axis=0, keepdims=True)
    y = jnp.sqrt(jnp.mean(jnp.square(y), axis=0) + eps)
    y = y.mean(axis=(1, 2, 3), keepdims=True)
    y = y.mean(axis=0, keepdims=True)
    y = jnp.tile(y, (B, 1, H, W)).astype(x.dtype)
    return jnp.concatenate([x, y], axis=1)


if __name__ == "__main__":
    key = jax.random.PRNGKey(0)

    # 1) main check: f32, batch divisible by group_size -> grouped stats,
    #    multi-tile grid (4 x-tiles + 1 stat tile with the chosen tiling).
    B, C, H, W = 8, 4, 16, 16
    x = jax.random.normal(key, (B, C, H, W), dtype=jnp.float32)
    out = jax.block_until_ready(minibatch_stddev(x, group_size=4, eps=1e-8))
    ref = _reference(x, group_size=4, eps=1e-8)
    assert out.shape == (B, C + 1, H, W), out.shape
    assert jnp.allclose(out, ref, atol=1e-5, rtol=1e-5), "f32 mismatch vs reference"

    # 2) native low-precision I/O path (no wrapper up-cast).
    xb = x.astype(jnp.bfloat16)
    out_b = jax.block_until_ready(minibatch_stddev(xb, group_size=4, eps=1e-8))
    ref_b = _reference(xb, group_size=4, eps=1e-8)
    assert out_b.dtype == jnp.bfloat16
    assert jnp.allclose(out_b.astype(jnp.float32), ref_b.astype(jnp.float32),
                        atol=1e-2, rtol=1e-2), "bf16 mismatch vs reference"

    # 3) batch not divisible by group_size -> group_size falls back to B.
    x3 = jax.random.normal(jax.random.PRNGKey(1), (6, 4, 16, 16), dtype=jnp.float32)
    out3 = jax.block_until_ready(minibatch_stddev(x3, group_size=4, eps=1e-8))
    ref3 = _reference(x3, group_size=4, eps=1e-8)
    assert out3.shape == (6, 5, 16, 16), out3.shape
    assert jnp.allclose(out3, ref3, atol=1e-5, rtol=1e-5), "odd-batch mismatch"

    print("KERNEL_OK")
</pallas_src>

<mosaic_0001>
module attributes {stable_mosaic.version = 11 : i64} {
  func.func @_mbstd_kernel(%arg0: i32, %arg1: memref<8x256xf32, #tpu.memory_space<vmem>>, %arg2: memref<8x256xf32, #tpu.memory_space<vmem>>, %arg3: memref<1xf32, #tpu.memory_space<smem>>) attributes {dimension_semantics = [#tpu.dimension_semantics<arbitrary>], iteration_bounds = array<i64: 5>, scalar_prefetch = 0 : i64, scratch_operands = 1 : i64, tpu.core_type = #tpu.core_type<tc>, window_params = [{transform_indices = @transform_0, window_bounds = array<i64: 8, 256>}, {transform_indices = @transform_1, window_bounds = array<i64: 8, 256>}]} {
    %c0_i32 = arith.constant 0 : i32
    %0 = arith.cmpi eq, %arg0, %c0_i32 : i32
    %1 = arith.extui %0 : i1 to i32
    %c0_i32_0 = arith.constant 0 : i32
    %2 = arith.cmpi ne, %1, %c0_i32_0 : i32
    scf.if %2 {
      %cst = arith.constant 0.000000e+00 : f32
      %c0 = arith.constant 0 : index
      %9 = memref.load %arg3[%c0] : memref<1xf32, #tpu.memory_space<smem>>
      memref.store %cst, %arg3[%c0] : memref<1xf32, #tpu.memory_space<smem>>
    } else {
    }
    %c4_i32 = arith.constant 4 : i32
    %3 = arith.cmpi slt, %arg0, %c4_i32 : i32
    %4 = arith.extui %3 : i1 to i32
    %c0_i32_1 = arith.constant 0 : i32
    %5 = arith.cmpi ne, %4, %c0_i32_1 : i32
    scf.if %5 {
      %c0 = arith.constant 0 : index
      %c0_4 = arith.constant 0 : index
      %9 = vector.load %arg1[%c0, %c0_4] : memref<8x256xf32, #tpu.memory_space<vmem>>, vector<8x256xf32>
      %c0_5 = arith.constant 0 : index
      %c0_6 = arith.constant 0 : index
      %10 = vector.load %arg2[%c0_5, %c0_6] : memref<8x256xf32, #tpu.memory_space<vmem>>, vector<8x256xf32>
      tpu.vector_store %arg2[%c0_5, %c0_6], %9 {strides = array<i32>} : memref<8x256xf32, #tpu.memory_space<vmem>>, vector<8x256xf32>,
      %11 = vector.extract_strided_slice %9 {offsets = [0, 0], sizes = [2, 256], strides = [1, 1]} : vector<8x256xf32> to vector<2x256xf32>
      %12 = vector.extract_strided_slice %9 {offsets = [2, 0], sizes = [2, 256], strides = [1, 1]} : vector<8x256xf32> to vector<2x256xf32>
      %13 = arith.addf %11, %12 : vector<2x256xf32>
      %14 = vector.extract_strided_slice %9 {offsets = [4, 0], sizes = [2, 256], strides = [1, 1]} : vector<8x256xf32> to vector<2x256xf32>
      %15 = arith.addf %13, %14 : vector<2x256xf32>
      %16 = vector.extract_strided_slice %9 {offsets = [6, 0], sizes = [2, 256], strides = [1, 1]} : vector<8x256xf32> to vector<2x256xf32>
      %17 = arith.addf %15, %16 : vector<2x256xf32>
      %cst = arith.constant 2.500000e-01 : f32
      %18 = vector.broadcast %cst : f32 to vector<2x256xf32>
      %19 = arith.mulf %17, %18 : vector<2x256xf32>
      %cst_7 = arith.constant 0.000000e+00 : f32
      %20 = vector.broadcast %cst_7 : f32 to vector<2x256xf32>
      %21 = vector.extract_strided_slice %9 {offsets = [0, 0], sizes = [2, 256], strides = [1, 1]} : vector<8x256xf32> to vector<2x256xf32>
      %22 = arith.subf %21, %19 : vector<2x256xf32>
      %23 = arith.mulf %22, %22 : vector<2x256xf32>
      %24 = arith.addf %20, %23 : vector<2x256xf32>
      %25 = vector.extract_strided_slice %9 {offsets = [2, 0], sizes = [2, 256], strides = [1, 1]} : vector<8x256xf32> to vector<2x256xf32>
      %26 = arith.subf %25, %19 : vector<2x256xf32>
      %27 = arith.mulf %26, %26 : vector<2x256xf32>
      %28 = arith.addf %24, %27 : vector<2x256xf32>
      %29 = vector.extract_strided_slice %9 {offsets = [4, 0], sizes = [2, 256], strides = [1, 1]} : vector<8x256xf32> to vector<2x256xf32>
      %30 = arith.subf %29, %19 : vector<2x256xf32>
      %31 = arith.mulf %30, %30 : vector<2x256xf32>
      %32 = arith.addf %28, %31 : vector<2x256xf32>
      %33 = vector.extract_strided_slice %9 {offsets = [6, 0], sizes = [2, 256], strides = [1, 1]} : vector<8x256xf32> to vector<2x256xf32>
      %34 = arith.subf %33, %19 : vector<2x256xf32>
      %35 = arith.mulf %34, %34 : vector<2x256xf32>
      %36 = arith.addf %32, %35 : vector<2x256xf32>
      %cst_8 = arith.constant 2.500000e-01 : f32
      %37 = vector.broadcast %cst_8 : f32 to vector<2x256xf32>
      %38 = arith.mulf %36, %37 : vector<2x256xf32>
      %cst_9 = arith.constant 9.99999993E-9 : f32
      %39 = vector.broadcast %cst_9 : f32 to vector<2x256xf32>
      %40 = arith.addf %38, %39 : vector<2x256xf32>
      %41 = math.sqrt %40 : vector<2x256xf32>
      %c0_10 = arith.constant 0 : index
      %42 = memref.load %arg3[%c0_10] : memref<1xf32, #tpu.memory_space<smem>>
      %43 = vector.shape_cast %41 : vector<2x256xf32> to vector<1x2x256xf32>
      %cst_11 = arith.constant dense<0.000000e+00> : vector<1xf32>
      %44 = vector.multi_reduction <add>, %43, %cst_11 [1, 2] : vector<1x2x256xf32> to vector<1xf32>
      %45 = vector.shape_cast %44 : vector<1xf32> to vector<1x1x1xf32>
      %46 = vector.extract %45[0, 0, 0] : f32 from vector<1x1x1xf32>
      %47 = arith.addf %42, %46 : f32
      %c0_12 = arith.constant 0 : index
      %48 = memref.load %arg3[%c0_12] : memref<1xf32, #tpu.memory_space<smem>>
      memref.store %47, %arg3[%c0_12] : memref<1xf32, #tpu.memory_space<smem>>
    } else {
    }
    %c4_i32_2 = arith.constant 4 : i32
    %6 = arith.cmpi sge, %arg0, %c4_i32_2 : i32
    %7 = arith.extui %6 : i1 to i32
    %c0_i32_3 = arith.constant 0 : i32
    %8 = arith.cmpi ne, %7, %c0_i32_3 : i32
    scf.if %8 {
      %c0 = arith.constant 0 : index
      %9 = memref.load %arg3[%c0] : memref<1xf32, #tpu.memory_space<smem>>
      %cst = arith.constant 4.8828125E-4 : f32
      %10 = arith.mulf %9, %cst : f32
      %11 = vector.broadcast %10 : f32 to vector<8x256xf32>
      %c0_4 = arith.constant 0 : index
      %c0_5 = arith.constant 0 : index
      %12 = vector.load %arg2[%c0_4, %c0_5] : memref<8x256xf32, #tpu.memory_space<vmem>>, vector<8x256xf32>
      tpu.vector_store %arg2[%c0_4, %c0_5], %11 {strides = array<i32>} : memref<8x256xf32, #tpu.memory_space<vmem>>, vector<8x256xf32>,
    } else {
    }
    return
  }
  func.func @transform_0(%arg0: i32) -> (i32, i32) {
    %c3_i32 = arith.constant 3 : i32
    %0 = arith.minsi %arg0, %c3_i32 : i32
    %c0_i32 = arith.constant 0 : i32
    %c0_i32_0 = arith.constant 0 : i32
    return %c0_i32, %0 : i32, i32
  }
  func.func @transform_1(%arg0: i32) -> (i32, i32) {
    %c0_i32 = arith.constant 0 : i32
    %c0_i32_0 = arith.constant 0 : i32
    return %c0_i32, %arg0 : i32, i32
  }
}

</mosaic_0001>

<bundles_post_ra>
// kernel: tpu_custom_call.1
= control target key start
LH: loop header
LB: loop body
LE: loop exit
PB: predicated region body
PF: predicated region fallthrough
CT: control target
= control target key end

     0   :  { %6 = vsyncpa [#allocation4], 0  ;;  %s796_s0 = inlined_call_operand.hbm [shape: f32[8,1024], index: 0, kind: input, shape index: {}]   ;;  %s797_s1 = inlined_call_operand.hbm [shape: f32[8,1280], index: 1, kind: output, shape index: {}]  }
   0x1   :  { %8 = vsyncpa [#allocation4 + $0x1], 0 }
   0x2   :  { %9 = vsyncpa [#allocation5], 0 }
   0x3   :  { %11 = vsyncpa [#allocation5 + $0x1], 0  ;;  %s598_s6 = smov 0   ;;  %s600_s7 = smov 0  }
   0x4   :  { %s602_s8 = smov 0   ;;  %s604_s9 = smov 0  }
   0x5   :  { %s606_s10 = smov 0   ;;  %s608_s11 = smov 0  }
   0x6   :  { %s610_s12 = smov 0  }
   0x7 LB: > { %s632_s13 = sadd.s32 4294967295, %s583_s12   ;;  %s364_s14 = sadd.s32 4294967294, %s583_s12   ;;  %s583_s12 = sphi %s610_s12, %s816_s12   ;;  %s579_s11 = sphi %s608_s11, %s815_s11   ;;  %s575_s10 = sphi %s606_s10, %s814_s10   ;;  %s571_s9 = sphi %s604_s9, %s813_s9   ;;  %s567_s8 = sphi %s602_s8, %s812_s8   ;;  %s563_s7 = sphi %s600_s7, %s811_s7   ;;  %s559_s6 = sphi %s598_s6, %s810_s6  }
   0x8   : > { %s636_s15 = sadd.s32 1, %s583_s12   ;;  %p21_p0 = scmp.lt.s32.totalorder %s583_s12, 3 }
   0x9   : > { %p23_p1 = scmp.lt.s32.totalorder %s636_s15, 3  ;;  %s28_s16 = sadd.s32 1, %s579_s11 }
   0xa   : > { %s22_s17 = scalar_select %p21_p0, %s583_s12, 3 }
   0xb   : > { %s24_s18 = scalar_select %p23_p1, %s636_s15, 3 }
   0xc   : > { %p35_p2 = scmp.ne.s32.totalorder %s579_s11, %s575_s10  ;;  %p36_p3 = scmp.eq.s32.totalorder %s583_s12, 0 }
   0xd   : > { %s25_s19 = ssub.s32 %s22_s17, %s24_s18  ;;  %p41_p4 = scmp.ne.s32.totalorder %s575_s10, %s571_s9 }
   0xe   : > { %p26_p5 = scmp.eq.s32.totalorder %s25_s19, 0  ;;  %p647_p6 = por %p36_p3, %p35_p2 }
   0xf   : > { %p798_p7 = scmp.eq.s32.totalorder %s632_s13, 0  ;;  %s51_s21 = ssub.s32 %s583_s12, %s636_s15 }
  0x10   : > { %s655_s22 = scalar_select %p26_p5, %s579_s11, %s28_s16  }
  0x11   : > { %p659_p8 = por %p798_p7, %p41_p4  ;;  %p52_p9 = scmp.eq.s32.totalorder %s51_s21, 0 }
  0x12   : > { %s54_s24 = sadd.s32 1, %s567_s8  ;;  %p64_p10 = scmp.ne.s32.totalorder %s567_s8, %s563_s7 }
  0x13   : > { %s667_s25 = scalar_select %p52_p9, %s567_s8, %s54_s24  }
  0x14   : > { %p65_p11 = scmp.eq.s32.totalorder %s632_s13, 4  ;;  %p70_p12 = scmp.ne.s32.totalorder %s563_s7, %s559_s6 }
  0x15   : > { %p71_p13 = scmp.eq.s32.totalorder %s364_s14, 4  ;;  %p399_p1 = scmp.lt.s32.totalorder %s583_s12, 5 }
  0x16   : > { %p672_p0 = por %p65_p11, %p64_p10  ;;  %s91_s28 = sand.u32 1, %s579_s11  }
  0x17   : > { %p677_p2 = por %p71_p13, %p70_p12  ;;  %s367_s29 = sshll.u32 %s91_s28, 4 }
  0x18   : > { %s802_s26 = scalar_select %p672_p0, 1, 0 }
  0x19   : > { %s803_s27 = scalar_select %p677_p2, 1, 0 }
  0x1a   : > { %s381_s30 = sshll.u32 %s22_s17, 8  ;;  %s95_s5 = scalar_lea.vmem [#allocation3], %s367_s29 }
  0x1b   : > { %s685_s4 = scalar_lea.hbm %s796_s0, %s381_s30  ;;  %s105_s9 = sshll.u32 %s95_s5, 4  ;;  %s687_s9 = int_to_ptr.vmem [resolvable:$true] %s105_s9 }
  0x1c   : > { %p691_p3 = pnand %p399_p1, %p647_p6  ;;  %s92_s16 = scalar_lea.sflag [#allocation4], %s91_s28 }
  0x1d   : > { %s463_s17 = scalar_lea.hbm %s685_s4, 256  ;;  %s468_s20 = scalar_lea.hbm %s796_s0, 1024 }
  0x1e   : > { %p464_p9 = scmp.ne.s32.totalorder %s685_s4, %s463_s17  ;;  %p465_p10 = pneg %p691_p3 }
  0x1f   : > { %p469_p6 = scmp.lt.u32.totalorder %s685_s4, %s796_s0  ;;  %p470_p13 = scmp.lt.u32.totalorder %s468_s20, %s463_s17 }
  0x20   : > { %p466_p11 = pnand %p465_p10, %p464_p9  ;;  %p472_p7 = scmp.lt.u32.totalorder %s463_s17, %s685_s4 }
  0x21   : > { %p471_p1 = por %p470_p13, %p469_p6 }
  0x22   : > { %p467_p12 = pneg %p466_p11 }
  0x23   : > { %p473_p4 = por %p472_p7, %p471_p1 }
  0x25   : > { %p474_p5 = pnand %p473_p4, %p467_p12 }
  0x27   : > { %477 = shalt.err (!%p474_p5)
}
  0x28   : > { %s478_s28 = scalar_lea.vmem %s687_s9, 256  ;;  %s585_s29 = smov [#allocation3]  }
  0x29   : > { %p479_p9 = scmp.ne.s32.totalorder %s687_s9, %s478_s28  ;;  %s483_s30 = sshll.u32 %s585_s29, 4  ;;  %s484_s30 = int_to_ptr.vmem [resolvable:$false] %s483_s30 }
  0x2a   : > { %s485_s2 = scalar_lea.vmem %s484_s30, 512  ;;  %p486_p0 = scmp.lt.s32.totalorder %s687_s9, %s484_s30 }
  0x2b   : > { %p481_p11 = pnand %p479_p9, %p465_p10  ;;  %p487_p6 = scmp.lt.s32.totalorder %s485_s2, %s478_s28 }
  0x2d   : > { %p482_p2 = pneg %p481_p11  ;;  %p488_p13 = por %p487_p6, %p486_p0 }
  0x2f   : > { %p489_p7 = pnand %p488_p13, %p482_p2 }
  0x31   : > { %492 = shalt.err (!%p489_p7)
}
  0x32   : > { %394 = dma.hbm_to_vmem [thread:$0]  (!%p691_p3), %s685_s4, 256, %s687_s9, %s92_s16  }
  0x33   : > { %p805_p4 = scmp.lt.s32.totalorder %s583_s12, 6  ;;  %p806_p5 = scmp.ge.s32.totalorder %s583_s12, 1 }
  0x35   : > { %p111_p10 = pnand %p806_p5, %p805_p4 }
  0x36   : > { %s116_s3 = sand.u32 (!%p111_p10), 1, %s575_s10  }
  0x37   : > { %114 = sbr.rel (%p111_p10) target bundleno = 357 (0x165), region = 24  ;;  %s371_s5 = sshll.u32 (!%p111_p10), %s116_s3, 4 }
  0x38   : > { %s117_s17 = scalar_lea.sflag (!%p111_p10), [#allocation4], %s116_s3  ;;  %s120_s18 = scalar_lea.vmem (!%p111_p10), [#allocation3], %s371_s5 }
  0x3e   : > { %550 = dma.done.wait (%p659_p8), %s117_s17, 256  }
  0x3f   : > { %552 = vsyncadd (%p659_p8), %s117_s17, 4294967040  ;;  %s136_s14 = sand.u32 1, %s563_s7   ;;  %s586_s4 = smov 0.0  }
  0x40   : > { %p807_p0 = scmp.eq.s32.totalorder %s632_s13, 0  ;;  %s372_s9 = sshll.u32 %s136_s14, 4 }
  0x41   : > { %s736_s16 = scalar_lea.vmem [#allocation6], %s372_s9  ;;  %p374_p2 = scmp.ge.s32.totalorder %s632_s13, 4 }
  0x42   : > { %388 = sst [smem:[#allocation2]] (%p807_p0), %s586_s4  ;;  %v153_v0 = vld [vmem:[%s120_s18] sm:$0xff] (!%p374_p2)  ;;  %v154_v1 = vld [vmem:[%s120_s18 + $0x8] sm:$0xff] (!%p374_p2)  ;;  %vm254_vm4 = vcmask (!%p374_p2), 1041408  }
  0x43   : > { %152 = sbr.rel (%p374_p2) target bundleno = 321 (0x141), region = 36  ;;  %155 = vst [vmem:[%s736_s16] sm:$0xff] (!%p374_p2), %v153_v0  ;;  %156 = vst [vmem:[%s736_s16 + $0x8] sm:$0xff] (!%p374_p2), %v154_v1  ;;  %v159_v2 = vrot.slane (!%p374_p2), %v153_v0, 2  ;;  %v160_v3 = vrot.slane (!%p374_p2), %v154_v1, 2  ;;  %v165_v4 = vrot.slane (!%p374_p2), %v153_v0, 4  ;;  %v166_v5 = vrot.slane (!%p374_p2), %v154_v1, 4 }
  0x44   : > { %v171_v8 = vrot.slane (!%p374_p2), %v153_v0, 6  ;;  %v172_v9 = vrot.slane (!%p374_p2), %v154_v1, 6  ;;  %s253_s23 = sld [smem:[#allocation2]] (!%p374_p2) }
  0x45   : > { %v163_v6 = vadd.f32 (!%p374_p2), %v159_v2, %v153_v0  ;;  %v164_v7 = vadd.f32 (!%p374_p2), %v160_v3, %v154_v1 }
  0x47   : > { %v169_v10 = vadd.f32 (!%p374_p2), %v165_v4, %v163_v6  ;;  %v170_v11 = vadd.f32 (!%p374_p2), %v166_v5, %v164_v7 }
  0x49   : > { %v175_v12 = vadd.f32 (!%p374_p2), %v171_v8, %v169_v10  ;;  %v176_v13 = vadd.f32 (!%p374_p2), %v172_v9, %v170_v11 }
  0x4b   : > { %v177_v14 = vmul.f32 0.25, %v175_v12  ;;  %v178_v15 = vmul.f32 0.25, %v176_v13 }
  0x4d   : > { %v179_v16 = vsub.f32 %v153_v0, %v177_v14  ;;  %v180_v17 = vsub.f32 %v154_v1, %v178_v15  ;;  %v187_v18 = vrot.slane %v177_v14, 6  ;;  %v188_v19 = vrot.slane %v178_v15, 6 }
  0x4e   : > { %v203_v20 = vrot.slane %v177_v14, 4  ;;  %v204_v21 = vrot.slane %v178_v15, 4  ;;  %v219_v22 = vrot.slane %v177_v14, 2  ;;  %v220_v23 = vrot.slane %v178_v15, 2 }
  0x4f   : > { %v191_v24 = vsub.f32 %v153_v0, %v187_v18  ;;  %v192_v25 = vsub.f32 %v154_v1, %v188_v19  ;;  %v181_v30 = vmul.f32 %v179_v16, %v179_v16  ;;  %v182_v31 = vmul.f32 %v180_v17, %v180_v17 }
  0x50   : > { %v207_v26 = vsub.f32 %v153_v0, %v203_v20  ;;  %v208_v27 = vsub.f32 %v154_v1, %v204_v21  ;;  %v223_v28 = vsub.f32 %v153_v0, %v219_v22  ;;  %v224_v29 = vsub.f32 %v154_v1, %v220_v23 }
  0x51   : > { %v193_v32 = vmul.f32 %v191_v24, %v191_v24  ;;  %v194_v33 = vmul.f32 %v192_v25, %v192_v25 }
  0x52   : > { %v209_v34 = vmul.f32 %v207_v26, %v207_v26  ;;  %v210_v35 = vmul.f32 %v208_v27, %v208_v27  ;;  %v225_v36 = vmul.f32 %v223_v28, %v223_v28  ;;  %v226_v37 = vmul.f32 %v224_v29, %v224_v29 }
  0x53   : > { %v197_v38 = vrot.slane %v193_v32, 2  ;;  %v198_v39 = vrot.slane %v194_v33, 2 }
  0x54   : > { %v213_v40 = vrot.slane %v209_v34, 4  ;;  %v214_v41 = vrot.slane %v210_v35, 4  ;;  %v229_v44 = vrot.slane %v225_v36, 6  ;;  %v230_v45 = vrot.slane %v226_v37, 6 }
  0x55   : > { %v201_v42 = vadd.f32 %v197_v38, %v181_v30  ;;  %v202_v43 = vadd.f32 %v198_v39, %v182_v31 }
  0x57   : > { %v217_v46 = vadd.f32 %v213_v40, %v201_v42  ;;  %v218_v47 = vadd.f32 %v214_v41, %v202_v43 }
  0x59   : > { %v233_v48 = vadd.f32 %v229_v44, %v217_v46  ;;  %v234_v49 = vadd.f32 %v230_v45, %v218_v47 }
  0x5b   : > { %v235_v50 = vmul.f32 0.25, %v233_v48  ;;  %v236_v51 = vmul.f32 0.25, %v234_v49 }
  0x5d   : > { %v237_v52 = vadd.f32 1e-08, %v235_v50  ;;  %v238_v53 = vadd.f32 1e-08, %v236_v51 }
  0x5f   : > { %459 = vrsqrt.f32 %v237_v52  ;;  %vm241_vm0 = vcmp.eq.f32.partialorder %v237_v52, inf  ;;  %v244_v55 = vand.u32 2147483648, %v237_v52  ;;  %vm243_vm1 = vcmp.eq.f32.partialorder %v237_v52, 0.0 }
  0x60   : > { %461 = vrsqrt.f32 %v238_v53  ;;  %vm248_vm2 = vcmp.eq.f32.partialorder %v238_v53, inf  ;;  %v251_v58 = vand.u32 2147483648, %v238_v53  ;;  %vm250_vm3 = vcmp.eq.f32.partialorder %v238_v53, 0.0 }
  0x69   : > { %v460_v54 = vpop.eup %459 }
  0x6a   : > { %v462_v56 = vpop.eup %461  ;;  %v240_v57 = vmul.f32 %v460_v54, %v237_v52 }
  0x6b   : > { %v247_v59 = vmul.f32 %v462_v56, %v238_v53 }
  0x6c   : > { %v242_v60 = vsel %vm241_vm0, %v237_v52, %v240_v57 }
  0x6d   : > { %v245_v61 = vsel %vm243_vm1, %v244_v55, %v242_v60  ;;  %v249_v62 = vsel %vm248_vm2, %v238_v53, %v247_v59 }
  0x6e   : > { %v252_v63 = vsel %vm250_vm3, %v251_v58, %v249_v62  ;;  %v255_v0 = vsel %vm254_vm4, %v245_v61, 0.0 }
  0x6f   : > { %v256_v1 = vsel %vm254_vm4, %v252_v63, 0.0 }
  0x70   : > { %v257_v2 = vadd.f32 %v256_v1, %v255_v0 }
  0x72   : > { %258 = vadd.xlane.f32.xlu0 %v257_v2 }
  0xff   : > { %v259_v3 = vpop.xlane.xlu0 %258 }
 0x100   : > { %v260_v4 = vrot.slane %v259_v3, 4 }
 0x102   : > { %v261_v5 = vadd.f32 %v260_v4, %v259_v3 }
 0x104   : > { %v262_v6 = vrot.slane %v261_v5, 2 }
 0x106   : > { %v263_v7 = vadd.f32 %v262_v6, %v261_v5 }
 0x108   : > { %v264_v8 = vrot.slane %v263_v7, 1 }
 0x10a   : > { %v265_v9 = vadd.f32 %v264_v8, %v263_v7 }
 0x10c   : > { %383 = vpush %v265_v9 }
 0x13d   : > { %s384_s19 = spop %383 }
 0x13e   : > { %s267_s20 = sadd.f32 %s384_s19, %s253_s23 }
 0x140   : > { %269 = sst [smem:[#allocation2]] %s267_s20 }
 0x141 PF: > { %p375_p8 = scmp.lt.s32.totalorder %s632_s13, 4 }
 0x142   : > { %s274_s21 = sld [smem:[#allocation2]] (!%p375_p8) }
 0x143   : > { %273 = sbr.rel (%p375_p8) target bundleno = 332 (0x14c), region = 40 }
 0x148   : > { %s275_s24 = smul.f32 (!%p375_p8), 0.00048828125, %s274_s21 }
 0x14a   : > { %v276_v10 = vstv %s275_s24 }
 0x14b   : > { %277 = vst [vmem:[%s736_s16] sm:$0xff] %v276_v10  ;;  %278 = vst [vmem:[%s736_s16 + $0x8] sm:$0xff] %v276_v10 }
 0x14c PF: > { %s382_s28 = sshll.u32 %s632_s13, 8  ;;  %s294_s3 = sshll.u32 %s736_s16, 4  ;;  %s295_s3 = int_to_ptr.vmem [resolvable:$true] %s294_s3 }
 0x14d   : > { %s748_s2 = scalar_lea.hbm %s797_s1, %s382_s28  ;;  %s280_s5 = scalar_lea.sflag [#allocation5], %s136_s14 }
 0x14e   : > { %s493_s17 = scalar_lea.vmem %s295_s3, 256  ;;  %p808_p12 = scmp.ne.s32.totalorder %s802_s26, 0 }
 0x14f   : > { %p494_p3 = scmp.ne.s32.totalorder %s295_s3, %s493_s17  ;;  %s587_s18 = smov [#allocation6]  }
 0x150   : > { %s497_s4 = sshll.u32 %s587_s18, 4  ;;  %s498_s4 = int_to_ptr.vmem [resolvable:$false] %s497_s4 }
 0x151   : > { %p495_p1 = pnand %p494_p3, %p808_p12  ;;  %s499_s9 = scalar_lea.vmem %s498_s4, 512 }
 0x152   : > { %p500_p11 = scmp.lt.s32.totalorder %s295_s3, %s498_s4  ;;  %p501_p6 = scmp.lt.s32.totalorder %s499_s9, %s493_s17 }
 0x153   : > { %p496_p9 = pneg %p495_p1 }
 0x154   : > { %p502_p13 = por %p501_p6, %p500_p11 }
 0x156   : > { %p503_p7 = pnand %p502_p13, %p496_p9 }
 0x158   : > { %506 = shalt.err (!%p503_p7)
}
 0x159   : > { %s507_s13 = scalar_lea.hbm %s748_s2, 256  ;;  %s511_s23 = scalar_lea.hbm %s797_s1, 1280 }
 0x15a   : > { %p508_p4 = scmp.ne.s32.totalorder %s748_s2, %s507_s13  ;;  %p512_p0 = scmp.lt.u32.totalorder %s748_s2, %s797_s1 }
 0x15b   : > { %p513_p2 = scmp.lt.u32.totalorder %s511_s23, %s507_s13  ;;  %p515_p3 = scmp.lt.u32.totalorder %s507_s13, %s748_s2 }
 0x15c   : > { %p509_p5 = pnand %p508_p4, %p808_p12 }
 0x15d   : > { %p514_p8 = por %p513_p2, %p512_p0 }
 0x15e   : > { %p510_p10 = pneg %p509_p5 }
 0x15f   : > { %p516_p1 = por %p515_p3, %p514_p8 }
 0x161   : > { %p517_p9 = pnand %p516_p1, %p510_p10 }
 0x163   : > { %520 = shalt.err (!%p517_p9)
}
 0x164   : > { %389 = dma.vmem_to_hbm [thread:$0]  (%p808_p12), %s295_s3, 256, %s748_s2, %s280_s5  }
 0x165 PF: > { %p401_p11 = scmp.ge.s32.totalorder %s583_s12, 2  ;;  %s306_s21 = sand.u32 1, %s559_s6  }
 0x166   : > { %p809_p6 = scmp.ne.s32.totalorder %s803_s27, 0  ;;  %s307_s24 = scalar_lea.sflag [#allocation5], %s306_s21 }
 0x168   : > { %p396_p13 = pnand %p401_p11, %p809_p6 }
 0x16a   : > { %554 = dma.done.wait (!%p396_p13), %s307_s24, 256  }
 0x16b   : > { %556 = vsyncadd (!%p396_p13), %s307_s24, 4294967040  ;;  %p14_p12 = scmp.ge.s32.totalorder %s636_s15, 7   ;;  %s810_s6 = smov %s563_s7 }
 0x16c   : > { %s811_s7 = smov %s567_s8  ;;  %s812_s8 = smov %s667_s25 }
 0x16d   : > { %s813_s9 = smov %s575_s10  ;;  %s814_s10 = smov %s579_s11 }
 0x16e   : > { %s815_s11 = smov %s655_s22  ;;  %s816_s12 = smov %s636_s15 }
 0x16f   :  { %16 = sbr.rel (!%p14_p12) target bundleno = 7 (0x7), region = 83 }
 0x176   :  { %312 = vsyncpa [#allocation4], 1 }
 0x177   :  { %314 = vsyncpa [#allocation4 + $0x1], 1 }
 0x178   :  { %315 = vsyncpa [#allocation5], 1 }
 0x179   :  { %317 = vsyncpa [#allocation5 + $0x1], 1 }

</bundles_post_ra>
